<compile_context>
chip_gen: v5e
topology: v5e:2x2
jax: 0.10.0
libtpu: 0.0.40
codegen_flags: <defaults>
</compile_context>

<pallas_src>
import functools
import math

import numpy as np
import jax
import jax.numpy as jnp
from jax.experimental import pallas as pl
from jax.experimental.pallas import tpu as pltpu


# ---------------------------------------------------------------------------
# helpers
# ---------------------------------------------------------------------------

def _pick_tile(m, target=256):
    """Largest tile <= target that divides m (multiple of 8), else full m."""
    if m <= target:
        return m
    for t in (target, 128, 64, 32, 16, 8):
        if m % t == 0:
            return t
    return m


_COMPILER_PARAMS_1D = pltpu.CompilerParams(
    dimension_semantics=("parallel",),
    vmem_limit_bytes=48 * 1024 * 1024,
)


def _softmax_lastdim(s):
    """Numerically-stable softmax over the last axis; EUP reciprocal + Newton."""
    smax = jnp.max(s, axis=-1, keepdims=True)
    e = jnp.exp(s - smax)
    denom = jnp.sum(e, axis=-1, keepdims=True)
    r = pl.reciprocal(denom, approx=True)
    r = r * (2.0 - denom * r)          # one Newton refinement -> ~exact 1/denom
    return e * r


def _residual_layernorm(y, g, b, eps):
    mu = jnp.mean(y, axis=-1, keepdims=True)
    var = jnp.mean(jnp.square(y - mu), axis=-1, keepdims=True)
    return (y - mu) * jax.lax.rsqrt(var + eps) * g + b


# ---------------------------------------------------------------------------
# Attention kernels (one batch element per grid step, all heads batched)
# ---------------------------------------------------------------------------

def _self_mha_ln_kernel(x_ref, padk_ref, wqkv_ref, bqkv_ref, wo_ref, bo_ref,
                        g_ref, b_ref, out_ref, prob_ref, *,
                        n_head, d_head, scale, eps, causal):
    nh = n_head
    x = x_ref[0]                                        # (S, D)
    S, D = x.shape

    # Fused head-major Q/K/V projection: (3*nh, S, dh) in ONE batched dot.
    xb = jnp.broadcast_to(x[None], (3 * nh, S, D))
    qkv = jax.lax.dot_general(
        xb, wqkv_ref[...],
        dimension_numbers=(((2,), (1,)), ((0,), (0,))),
        preferred_element_type=jnp.float32) + bqkv_ref[...]
    q = qkv[:nh]                                        # (nh, S, dh)
    k = qkv[nh:2 * nh]
    v = qkv[2 * nh:]

    # All-heads scores: (nh, S, S)
    s = jax.lax.dot_general(
        q, k, dimension_numbers=(((2,), (2,)), ((0,), (0,))),
        preferred_element_type=jnp.float32) * scale

    # Mask: key-side pad (streamed, O(S)) + optional in-kernel causal.
    mask = jnp.broadcast_to(padk_ref[0] > 0, (S, S))    # (S, S) bool
    if causal:
        qi = jax.lax.broadcasted_iota(jnp.int32, (S, S), 0)
        ki = jax.lax.broadcasted_iota(jnp.int32, (S, S), 1)
        mask = jnp.logical_or(mask, ki > qi)
    s = jnp.where(mask[None], jnp.float32(-1e9), s)

    probs = _softmax_lastdim(s)                         # (nh, S, S)
    prob_ref[0] = probs                                 # one lane-dense write

    # Context (nh, S, dh) and head-major W_O product, summed over heads.
    ctx = jax.lax.dot_general(
        probs, v, dimension_numbers=(((2,), (1,)), ((0,), (0,))),
        preferred_element_type=jnp.float32)
    yo = jax.lax.dot_general(
        ctx, wo_ref[...], dimension_numbers=(((2,), (1,)), ((0,), (0,))),
        preferred_element_type=jnp.float32)             # (nh, S, D)
    y = x + jnp.sum(yo, axis=0) + bo_ref[...]
    out_ref[0] = _residual_layernorm(y, g_ref[...], b_ref[...], eps)


def _cross_mha_ln_kernel(x_ref, enc_ref, padk_ref, wq_ref, bq_ref, wkv_ref,
                         bkv_ref, wo_ref, bo_ref, g_ref, b_ref,
                         out_ref, prob_ref, *, n_head, d_head, scale, eps):
    nh = n_head
    x = x_ref[0]                                        # (Sq, D)
    enc = enc_ref[0]                                    # (Sk, D)
    Sq, D = x.shape
    Sk = enc.shape[0]

    xb = jnp.broadcast_to(x[None], (nh, Sq, D))
    q = jax.lax.dot_general(
        xb, wq_ref[...],
        dimension_numbers=(((2,), (1,)), ((0,), (0,))),
        preferred_element_type=jnp.float32) + bq_ref[...]        # (nh, Sq, dh)

    eb = jnp.broadcast_to(enc[None], (2 * nh, Sk, D))
    kv = jax.lax.dot_general(
        eb, wkv_ref[...],
        dimension_numbers=(((2,), (1,)), ((0,), (0,))),
        preferred_element_type=jnp.float32) + bkv_ref[...]       # (2*nh, Sk, dh)
    k = kv[:nh]
    v = kv[nh:]

    s = jax.lax.dot_general(
        q, k, dimension_numbers=(((2,), (2,)), ((0,), (0,))),
        preferred_element_type=jnp.float32) * scale              # (nh, Sq, Sk)

    mask = jnp.broadcast_to(padk_ref[0] > 0, (Sq, Sk))
    s = jnp.where(mask[None], jnp.float32(-1e9), s)

    probs = _softmax_lastdim(s)
    prob_ref[0] = probs

    ctx = jax.lax.dot_general(
        probs, v, dimension_numbers=(((2,), (1,)), ((0,), (0,))),
        preferred_element_type=jnp.float32)                      # (nh, Sq, dh)
    yo = jax.lax.dot_general(
        ctx, wo_ref[...], dimension_numbers=(((2,), (1,)), ((0,), (0,))),
        preferred_element_type=jnp.float32)                      # (nh, Sq, D)
    y = x + jnp.sum(yo, axis=0) + bo_ref[...]
    out_ref[0] = _residual_layernorm(y, g_ref[...], b_ref[...], eps)


# ---------------------------------------------------------------------------
# Fused FFN + residual + LayerNorm kernel
# ---------------------------------------------------------------------------

def _ffn_res_ln_kernel(x_ref, w1_ref, b1_ref, w2_ref, b2_ref, g_ref, bb_ref,
                       o_ref, *, eps):
    x = x_ref[...]
    h = jnp.dot(x, w1_ref[...], preferred_element_type=jnp.float32) + b1_ref[...]
    h = 0.5 * h * (1.0 + jax.lax.erf(h * 0.7071067811865476))      # exact GELU
    y = x + jnp.dot(h, w2_ref[...], preferred_element_type=jnp.float32) + b2_ref[...]
    o_ref[...] = _residual_layernorm(y, g_ref[...], bb_ref[...], eps)


# ---------------------------------------------------------------------------
# Pallas-call wrappers
# ---------------------------------------------------------------------------

def fused_self_attention_block(p, x, key_pad, ln_g, ln_b, cfg, *, causal):
    """x: (bs, S, D); key_pad: (bs, 1, S) int32 -> LN(x + MHA(x)), probs."""
    bs, S, D = x.shape
    nh, dh = cfg["n_head"], cfg["d_head"]
    nhd = nh * dh
    scale = 1.0 / math.sqrt(dh)
    eps = cfg["layer_norm_epsilon"]

    flops = int(bs * (2 * S * D * 3 * nhd + 4 * nh * S * S * dh + 2 * S * nhd * D))
    trans = int(bs * nh * S * S + bs * S)
    nbytes = int(4 * (2 * bs * S * D + bs * S + 4 * nhd * D + 3 * nhd + 3 * D
                      + bs * nh * S * S))

    out, probs = pl.pallas_call(
        functools.partial(_self_mha_ln_kernel, n_head=nh, d_head=dh,
                          scale=scale, eps=eps, causal=causal),
        grid=(bs,),
        in_specs=[
            pl.BlockSpec((1, S, D), lambda b: (b, 0, 0)),
            pl.BlockSpec((1, 1, S), lambda b: (b, 0, 0)),
            pl.BlockSpec((3 * nh, D, dh), lambda b: (0, 0, 0)),
            pl.BlockSpec((3 * nh, 1, dh), lambda b: (0, 0, 0)),
            pl.BlockSpec((nh, dh, D), lambda b: (0, 0, 0)),
            pl.BlockSpec((1, D), lambda b: (0, 0)),
            pl.BlockSpec((1, D), lambda b: (0, 0)),
            pl.BlockSpec((1, D), lambda b: (0, 0)),
        ],
        out_specs=[
            pl.BlockSpec((1, S, D), lambda b: (b, 0, 0)),
            pl.BlockSpec((1, nh, S, S), lambda b: (b, 0, 0, 0)),
        ],
        out_shape=[
            jax.ShapeDtypeStruct((bs, S, D), jnp.float32),
            jax.ShapeDtypeStruct((bs, nh, S, S), jnp.float32),
        ],
        compiler_params=_COMPILER_PARAMS_1D,
        cost_estimate=pl.CostEstimate(flops=flops, transcendentals=trans,
                                      bytes_accessed=nbytes),
    )(x, key_pad, p["W_QKV"], p["b_QKV"], p["W_O"], p["b_O"].reshape(1, D),
      ln_g.reshape(1, D), ln_b.reshape(1, D))
    return out, probs


def fused_cross_attention_block(p, x, enc_out, key_pad, ln_g, ln_b, cfg):
    """Q from x (bs, Sq, D); K/V from enc_out (bs, Sk, D); key_pad: (bs,1,Sk)."""
    bs, Sq, D = x.shape
    Sk = enc_out.shape[1]
    nh, dh = cfg["n_head"], cfg["d_head"]
    nhd = nh * dh
    scale = 1.0 / math.sqrt(dh)
    eps = cfg["layer_norm_epsilon"]

    flops = int(bs * (2 * Sq * D * nhd + 2 * Sk * D * 2 * nhd
                      + 4 * nh * Sq * Sk * dh + 2 * Sq * nhd * D))
    trans = int(bs * nh * Sq * Sk + bs * Sq)
    nbytes = int(4 * (2 * bs * Sq * D + bs * Sk * D + bs * Sk + 4 * nhd * D
                      + 3 * nhd + 3 * D + bs * nh * Sq * Sk))

    out, probs = pl.pallas_call(
        functools.partial(_cross_mha_ln_kernel, n_head=nh, d_head=dh,
                          scale=scale, eps=eps),
        grid=(bs,),
        in_specs=[
            pl.BlockSpec((1, Sq, D), lambda b: (b, 0, 0)),
            pl.BlockSpec((1, Sk, D), lambda b: (b, 0, 0)),
            pl.BlockSpec((1, 1, Sk), lambda b: (b, 0, 0)),
            pl.BlockSpec((nh, D, dh), lambda b: (0, 0, 0)),
            pl.BlockSpec((nh, 1, dh), lambda b: (0, 0, 0)),
            pl.BlockSpec((2 * nh, D, dh), lambda b: (0, 0, 0)),
            pl.BlockSpec((2 * nh, 1, dh), lambda b: (0, 0, 0)),
            pl.BlockSpec((nh, dh, D), lambda b: (0, 0, 0)),
            pl.BlockSpec((1, D), lambda b: (0, 0)),
            pl.BlockSpec((1, D), lambda b: (0, 0)),
            pl.BlockSpec((1, D), lambda b: (0, 0)),
        ],
        out_specs=[
            pl.BlockSpec((1, Sq, D), lambda b: (b, 0, 0)),
            pl.BlockSpec((1, nh, Sq, Sk), lambda b: (b, 0, 0, 0)),
        ],
        out_shape=[
            jax.ShapeDtypeStruct((bs, Sq, D), jnp.float32),
            jax.ShapeDtypeStruct((bs, nh, Sq, Sk), jnp.float32),
        ],
        compiler_params=_COMPILER_PARAMS_1D,
        cost_estimate=pl.CostEstimate(flops=flops, transcendentals=trans,
                                      bytes_accessed=nbytes),
    )(x, enc_out, key_pad, p["W_Q"], p["b_Q"], p["W_KV"], p["b_KV"],
      p["W_O"], p["b_O"].reshape(1, D), ln_g.reshape(1, D), ln_b.reshape(1, D))
    return out, probs


def fused_ffn_block(p, x, ln_g, ln_b, cfg):
    """LayerNorm(x + Conv1d(GELU(Conv1d(x))))  on (bs, S, D)."""
    bs, S, D = x.shape
    M = bs * S
    F = p["w1"].shape[1]
    tm = _pick_tile(M)

    flops = int(4 * M * D * F)
    trans = int(M * F + M)
    nbytes = int(4 * (2 * M * D + 2 * D * F + F + 3 * D))

    out = pl.pallas_call(
        functools.partial(_ffn_res_ln_kernel, eps=cfg["layer_norm_epsilon"]),
        out_shape=jax.ShapeDtypeStruct((M, D), jnp.float32),
        grid=(M // tm,),
        in_specs=[
            pl.BlockSpec((tm, D), lambda i: (i, 0)),
            pl.BlockSpec((D, F), lambda i: (0, 0)),
            pl.BlockSpec((1, F), lambda i: (0, 0)),
            pl.BlockSpec((F, D), lambda i: (0, 0)),
            pl.BlockSpec((1, D), lambda i: (0, 0)),
            pl.BlockSpec((1, D), lambda i: (0, 0)),
            pl.BlockSpec((1, D), lambda i: (0, 0)),
        ],
        out_specs=pl.BlockSpec((tm, D), lambda i: (i, 0)),
        compiler_params=_COMPILER_PARAMS_1D,
        cost_estimate=pl.CostEstimate(flops=flops, transcendentals=trans,
                                      bytes_accessed=nbytes),
    )(x.reshape(M, D), p["w1"], p["b1"].reshape(1, F), p["w2"],
      p["b2"].reshape(1, D), ln_g.reshape(1, D), ln_b.reshape(1, D))
    return out.reshape(bs, S, D)


# ---------------------------------------------------------------------------
# Plain-JAX glue: embeddings, masks, layer wiring
# ---------------------------------------------------------------------------
# TODO(synk): embedding lookups + sinusoid table gather stay as XLA gathers
# (no clean Pallas equivalent worth writing at these sizes).

def get_sinusoid_table(n_seq, d_hidn):
    pos = np.arange(n_seq)[:, None].astype(np.float64)
    i = np.arange(d_hidn)[None, :]
    angle = pos / np.power(10000.0, 2 * (i // 2) / d_hidn)
    table = np.zeros((n_seq, d_hidn), dtype=np.float64)
    table[:, 0::2] = np.sin(angle[:, 0::2])
    table[:, 1::2] = np.cos(angle[:, 1::2])
    return jnp.asarray(table, dtype=jnp.float32)


def key_pad_mask(seq_k, i_pad):
    """(bs, Sk) tokens -> (bs, 1, Sk) int32 key-side pad mask."""
    return (seq_k == i_pad).astype(jnp.int32)[:, None, :]


def positions_for(inputs, i_pad):
    bs, S = inputs.shape
    pos = jnp.broadcast_to(jnp.arange(S, dtype=inputs.dtype)[None, :] + 1, (bs, S))
    return jnp.where(inputs == i_pad, 0, pos)


def encoder_layer(p, x, key_pad, cfg):
    x, attn_prob = fused_self_attention_block(
        p["self_attn"], x, key_pad, p["ln1_g"], p["ln1_b"], cfg, causal=False)
    x = fused_ffn_block(p["ffn"], x, p["ln2_g"], p["ln2_b"], cfg)
    return x, attn_prob


def decoder_layer(p, x, enc_out, dec_key_pad, enc_key_pad, cfg):
    x, sa_prob = fused_self_attention_block(
        p["self_attn"], x, dec_key_pad, p["ln1_g"], p["ln1_b"], cfg, causal=True)
    x, ea_prob = fused_cross_attention_block(
        p["enc_attn"], x, enc_out, enc_key_pad, p["ln2_g"], p["ln2_b"], cfg)
    x = fused_ffn_block(p["ffn"], x, p["ln3_g"], p["ln3_b"], cfg)
    return x, sa_prob, ea_prob


def encoder_forward(params, enc_inputs, cfg):
    pos = positions_for(enc_inputs, cfg["i_pad"])
    x = params["enc_emb"][enc_inputs] + params["enc_pos_emb"][pos]
    kp = key_pad_mask(enc_inputs, cfg["i_pad"])
    probs = []
    for lp in params["enc_layers"]:
        x, p = encoder_layer(lp, x, kp, cfg)
        probs.append(p)
    return x, tuple(probs)


def decoder_forward(params, dec_inputs, enc_inputs, enc_outputs, cfg):
    pos = positions_for(dec_inputs, cfg["i_pad"])
    x = params["dec_emb"][dec_inputs] + params["dec_pos_emb"][pos]
    dec_kp = key_pad_mask(dec_inputs, cfg["i_pad"])   # causal part added in-kernel
    enc_kp = key_pad_mask(enc_inputs, cfg["i_pad"])
    self_probs, enc_probs = [], []
    for lp in params["dec_layers"]:
        x, sp, ep = decoder_layer(lp, x, enc_outputs, dec_kp, enc_kp, cfg)
        self_probs.append(sp)
        enc_probs.append(ep)
    return x, tuple(self_probs), tuple(enc_probs)


def transformer_forward(params, enc_inputs, dec_inputs, cfg):
    enc_outputs, enc_self_attn_probs = encoder_forward(params, enc_inputs, cfg)
    dec_outputs, dec_self_attn_probs, dec_enc_attn_probs = decoder_forward(
        params, dec_inputs, enc_inputs, enc_outputs, cfg)
    return dec_outputs, enc_self_attn_probs, dec_self_attn_probs, dec_enc_attn_probs


# ---------------------------------------------------------------------------
# Deterministic parameter initialization (head-major fused weights)
# ---------------------------------------------------------------------------

def _init_linear(key, d_in, d_out):
    w = jax.random.normal(key, (d_in, d_out), jnp.float32) * 0.02
    b = jnp.zeros((d_out,), jnp.float32)
    return w, b


def _head_major_w(w, nh, dh):   # (D, nh*dh) -> (nh, D, dh)
    D = w.shape[0]
    return jnp.transpose(w.reshape(D, nh, dh), (1, 0, 2))


def _head_major_b(b, nh, dh):   # (nh*dh,) -> (nh, 1, dh)
    return b.reshape(nh, 1, dh)


def _init_self_mha(key, cfg):
    D, nh, dh = cfg["d_hidn"], cfg["n_head"], cfg["d_head"]
    ks = jax.random.split(key, 4)
    W_Q, b_Q = _init_linear(ks[0], D, nh * dh)
    W_K, b_K = _init_linear(ks[1], D, nh * dh)
    W_V, b_V = _init_linear(ks[2], D, nh * dh)
    W_O, b_O = _init_linear(ks[3], nh * dh, D)
    W_QKV = jnp.concatenate([_head_major_w(W_Q, nh, dh),
                             _head_major_w(W_K, nh, dh),
                             _head_major_w(W_V, nh, dh)], axis=0)   # (3nh, D, dh)
    b_QKV = jnp.concatenate([_head_major_b(b_Q, nh, dh),
                             _head_major_b(b_K, nh, dh),
                             _head_major_b(b_V, nh, dh)], axis=0)   # (3nh, 1, dh)
    return dict(W_QKV=W_QKV, b_QKV=b_QKV,
                W_O=W_O.reshape(nh, dh, D), b_O=b_O)


def _init_cross_mha(key, cfg):
    D, nh, dh = cfg["d_hidn"], cfg["n_head"], cfg["d_head"]
    ks = jax.random.split(key, 4)
    W_Q, b_Q = _init_linear(ks[0], D, nh * dh)
    W_K, b_K = _init_linear(ks[1], D, nh * dh)
    W_V, b_V = _init_linear(ks[2], D, nh * dh)
    W_O, b_O = _init_linear(ks[3], nh * dh, D)
    W_KV = jnp.concatenate([_head_major_w(W_K, nh, dh),
                            _head_major_w(W_V, nh, dh)], axis=0)    # (2nh, D, dh)
    b_KV = jnp.concatenate([_head_major_b(b_K, nh, dh),
                            _head_major_b(b_V, nh, dh)], axis=0)
    return dict(W_Q=_head_major_w(W_Q, nh, dh), b_Q=_head_major_b(b_Q, nh, dh),
                W_KV=W_KV, b_KV=b_KV,
                W_O=W_O.reshape(nh, dh, D), b_O=b_O)


def _init_ffn(key, cfg):
    D, F = cfg["d_hidn"], cfg["d_ff"]
    k1, k2 = jax.random.split(key)
    w1, b1 = _init_linear(k1, D, F)   # Conv1d(D->F, k=1) as matmul weight
    w2, b2 = _init_linear(k2, F, D)   # Conv1d(F->D, k=1)
    return dict(w1=w1, b1=b1, w2=w2, b2=b2)


def _init_enc_layer(key, cfg):
    k1, k2 = jax.random.split(key)
    D = cfg["d_hidn"]
    return dict(self_attn=_init_self_mha(k1, cfg), ffn=_init_ffn(k2, cfg),
                ln1_g=jnp.ones((D,), jnp.float32), ln1_b=jnp.zeros((D,), jnp.float32),
                ln2_g=jnp.ones((D,), jnp.float32), ln2_b=jnp.zeros((D,), jnp.float32))


def _init_dec_layer(key, cfg):
    k1, k2, k3 = jax.random.split(key, 3)
    D = cfg["d_hidn"]
    return dict(self_attn=_init_self_mha(k1, cfg), enc_attn=_init_cross_mha(k2, cfg),
                ffn=_init_ffn(k3, cfg),
                ln1_g=jnp.ones((D,), jnp.float32), ln1_b=jnp.zeros((D,), jnp.float32),
                ln2_g=jnp.ones((D,), jnp.float32), ln2_b=jnp.zeros((D,), jnp.float32),
                ln3_g=jnp.ones((D,), jnp.float32), ln3_b=jnp.zeros((D,), jnp.float32))


def init_transformer(key, cfg):
    k_ee, k_de, k_el, k_dl = jax.random.split(key, 4)
    params = dict(
        enc_emb=jax.random.normal(k_ee, (cfg["n_enc_vocab"], cfg["d_hidn"]), jnp.float32) * 0.02,
        dec_emb=jax.random.normal(k_de, (cfg["n_dec_vocab"], cfg["d_hidn"]), jnp.float32) * 0.02,
        enc_pos_emb=get_sinusoid_table(cfg["n_enc_seq"] + 1, cfg["d_hidn"]),  # frozen
        dec_pos_emb=get_sinusoid_table(cfg["n_dec_seq"] + 1, cfg["d_hidn"]),  # frozen
        enc_layers=[_init_enc_layer(k, cfg) for k in jax.random.split(k_el, cfg["n_layer"])],
        dec_layers=[_init_dec_layer(k, cfg) for k in jax.random.split(k_dl, cfg["n_layer"])],
    )
    return params


# ---------------------------------------------------------------------------
# Main
# ---------------------------------------------------------------------------

if __name__ == "__main__":
    cfg = dict(
        n_enc_vocab=16, n_dec_vocab=16,
        n_enc_seq=8, n_dec_seq=8,
        d_hidn=32, n_head=2, d_head=16, d_ff=64,
        n_layer=2, i_pad=0, layer_norm_epsilon=1e-12,
        dropout=0.0,  # eval-mode / deterministic: dropout is identity
    )

    key = jax.random.PRNGKey(0)
    k_params, k_enc, k_dec = jax.random.split(key, 3)
    params = init_transformer(k_params, cfg)

    bs = 2
    enc_inputs = jax.random.randint(k_enc, (bs, cfg["n_enc_seq"]), 1, cfg["n_enc_vocab"], jnp.int32)
    dec_inputs = jax.random.randint(k_dec, (bs, cfg["n_dec_seq"]), 1, cfg["n_dec_vocab"], jnp.int32)
    # add some padding tokens (i_pad = 0) to exercise the pad masks
    enc_inputs = enc_inputs.at[:, -2:].set(0)
    dec_inputs = dec_inputs.at[:, -1:].set(0)

    dec_out, enc_sa, dec_sa, dec_ea = transformer_forward(params, enc_inputs, dec_inputs, cfg)
    jax.block_until_ready(dec_out)
    for t in (enc_sa, dec_sa, dec_ea):
        for a in t:
            jax.block_until_ready(a)

    assert dec_out.shape == (bs, cfg["n_dec_seq"], cfg["d_hidn"])
    assert len(enc_sa) == cfg["n_layer"] and enc_sa[0].shape == (bs, cfg["n_head"], 8, 8)
    assert len(dec_sa) == cfg["n_layer"] and dec_sa[0].shape == (bs, cfg["n_head"], 8, 8)
    assert len(dec_ea) == cfg["n_layer"] and dec_ea[0].shape == (bs, cfg["n_head"], 8, 8)
    assert bool(jnp.all(jnp.isfinite(dec_out)))
    for t in (enc_sa, dec_sa, dec_ea):
        for a in t:
            assert bool(jnp.all(jnp.isfinite(a)))
    print("KERNEL_OK")
</pallas_src>

<mosaic_0001>
module attributes {stable_mosaic.version = 11 : i64} {
  func.func @_self_mha_ln_kernel(%arg0: i32, %arg1: memref<1x8x32xf32, #tpu.memory_space<vmem>>, %arg2: memref<1x1x8xi32, #tpu.memory_space<vmem>>, %arg3: memref<6x32x16xf32, #tpu.memory_space<vmem>>, %arg4: memref<6x1x16xf32, #tpu.memory_space<vmem>>, %arg5: memref<2x16x32xf32, #tpu.memory_space<vmem>>, %arg6: memref<1x32xf32, #tpu.memory_space<vmem>>, %arg7: memref<1x32xf32, #tpu.memory_space<vmem>>, %arg8: memref<1x32xf32, #tpu.memory_space<vmem>>, %arg9: memref<1x8x32xf32, #tpu.memory_space<vmem>>, %arg10: memref<1x2x8x8xf32, #tpu.memory_space<vmem>>) attributes {dimension_semantics = [#tpu.dimension_semantics<parallel>], iteration_bounds = array<i64: 2>, scalar_prefetch = 0 : i64, scratch_operands = 0 : i64, tpu.core_type = #tpu.core_type<tc>, window_params = [{transform_indices = @transform_0, window_bounds = array<i64: 1, 8, 32>}, {transform_indices = @transform_1, window_bounds = array<i64: 1, 1, 8>}, {pipeline_mode = #tpu.pipeline_mode<synchronous>, transform_indices = @transform_2, window_bounds = array<i64: 6, 32, 16>}, {pipeline_mode = #tpu.pipeline_mode<synchronous>, transform_indices = @transform_3, window_bounds = array<i64: 6, 1, 16>}, {pipeline_mode = #tpu.pipeline_mode<synchronous>, transform_indices = @transform_4, window_bounds = array<i64: 2, 16, 32>}, {pipeline_mode = #tpu.pipeline_mode<synchronous>, transform_indices = @transform_5, window_bounds = array<i64: 1, 32>}, {pipeline_mode = #tpu.pipeline_mode<synchronous>, transform_indices = @transform_6, window_bounds = array<i64: 1, 32>}, {pipeline_mode = #tpu.pipeline_mode<synchronous>, transform_indices = @transform_7, window_bounds = array<i64: 1, 32>}, {transform_indices = @transform_8, window_bounds = array<i64: 1, 8, 32>}, {transform_indices = @transform_9, window_bounds = array<i64: 1, 2, 8, 8>}]} {
    %c0 = arith.constant 0 : index
    %c0_0 = arith.constant 0 : index
    %c0_1 = arith.constant 0 : index
    %0 = vector.load %arg1[%c0, %c0_0, %c0_1] : memref<1x8x32xf32, #tpu.memory_space<vmem>>, vector<1x8x32xf32>
    %1 = vector.shape_cast %0 : vector<1x8x32xf32> to vector<8x32xf32>
    %2 = vector.shape_cast %1 : vector<8x32xf32> to vector<1x8x32xf32>
    %3 = vector.shape_cast %2 : vector<1x8x32xf32> to vector<1x8x32xf32>
    %4 = vector.broadcast %3 : vector<1x8x32xf32> to vector<6x8x32xf32>
    %c0_2 = arith.constant 0 : index
    %c0_3 = arith.constant 0 : index
    %c0_4 = arith.constant 0 : index
    %5 = vector.load %arg3[%c0_2, %c0_3, %c0_4] : memref<6x32x16xf32, #tpu.memory_space<vmem>>, vector<6x32x16xf32>
    %cst = arith.constant dense<0.000000e+00> : vector<6x8x16xf32>
    %6 = tpu.matmul %4, %5, %cst {dimension_numbers = #tpu.dot_dimension_numbers<[2], [1], [1], [2], [0, 0, 0, 1, 1, 2], [0], [0]>} : vector<6x8x32xf32>, vector<6x32x16xf32>, vector<6x8x16xf32> -> vector<6x8x16xf32>
    %c0_5 = arith.constant 0 : index
    %c0_6 = arith.constant 0 : index
    %c0_7 = arith.constant 0 : index
    %7 = vector.load %arg4[%c0_5, %c0_6, %c0_7] : memref<6x1x16xf32, #tpu.memory_space<vmem>>, vector<6x1x16xf32>
    %8 = vector.broadcast %7 : vector<6x1x16xf32> to vector<6x8x16xf32>
    %9 = arith.addf %6, %8 : vector<6x8x16xf32>
    %10 = vector.extract_strided_slice %9 {offsets = [0, 0, 0], sizes = [2, 8, 16], strides = [1, 1, 1]} : vector<6x8x16xf32> to vector<2x8x16xf32>
    %11 = vector.extract_strided_slice %9 {offsets = [2, 0, 0], sizes = [2, 8, 16], strides = [1, 1, 1]} : vector<6x8x16xf32> to vector<2x8x16xf32>
    %12 = vector.extract_strided_slice %9 {offsets = [4, 0, 0], sizes = [2, 8, 16], strides = [1, 1, 1]} : vector<6x8x16xf32> to vector<2x8x16xf32>
    %cst_8 = arith.constant dense<0.000000e+00> : vector<2x8x8xf32>
    %13 = tpu.matmul %10, %11, %cst_8 {dimension_numbers = #tpu.dot_dimension_numbers<[2], [2], [1], [1], [0, 0, 0, 1, 1, 1], [0], [0]>} : vector<2x8x16xf32>, vector<2x8x16xf32>, vector<2x8x8xf32> -> vector<2x8x8xf32>
    %cst_9 = arith.constant 2.500000e-01 : f32
    %14 = vector.broadcast %cst_9 : f32 to vector<2x8x8xf32>
    %15 = arith.mulf %13, %14 : vector<2x8x8xf32>
    %c0_10 = arith.constant 0 : index
    %c0_11 = arith.constant 0 : index
    %c0_12 = arith.constant 0 : index
    %16 = vector.load %arg2[%c0_10, %c0_11, %c0_12] : memref<1x1x8xi32, #tpu.memory_space<vmem>>, vector<1x1x8xi32>
    %17 = vector.shape_cast %16 : vector<1x1x8xi32> to vector<1x8xi32>
    %c0_i32 = arith.constant 0 : i32
    %18 = vector.broadcast %c0_i32 : i32 to vector<1x8xi32>
    %19 = arith.cmpi sgt, %17, %18 : vector<1x8xi32>
    %20 = vector.shape_cast %19 : vector<1x8xi1> to vector<1x8xi1>
    %21 = vector.broadcast %20 : vector<1x8xi1> to vector<8x8xi1>
    %22 = vector.shape_cast %21 : vector<8x8xi1> to vector<1x8x8xi1>
    %cst_13 = arith.constant -1.000000e+09 : f32
    %23 = vector.shape_cast %22 : vector<1x8x8xi1> to vector<1x8x8xi1>
    %24 = vector.broadcast %23 : vector<1x8x8xi1> to vector<2x8x8xi1>
    %25 = vector.broadcast %cst_13 : f32 to vector<2x8x8xf32>
    %26 = arith.select %24, %25, %15 : vector<2x8x8xi1>, vector<2x8x8xf32>
    %cst_14 = arith.constant dense<0xFF800000> : vector<2x8xf32>
    %27 = vector.multi_reduction <maximumf>, %26, %cst_14 [2] : vector<2x8x8xf32> to vector<2x8xf32>
    %28 = vector.shape_cast %27 : vector<2x8xf32> to vector<2x8x1xf32>
    %29 = vector.broadcast %28 : vector<2x8x1xf32> to vector<2x8x8xf32>
    %30 = arith.subf %26, %29 : vector<2x8x8xf32>
    %31 = math.exp %30 : vector<2x8x8xf32>
    %cst_15 = arith.constant dense<0.000000e+00> : vector<2x8xf32>
    %32 = vector.multi_reduction <add>, %31, %cst_15 [2] : vector<2x8x8xf32> to vector<2x8xf32>
    %33 = vector.shape_cast %32 : vector<2x8xf32> to vector<2x8x1xf32>
    %34 = tpu.reciprocal %33 {approx = true} : vector<2x8x1xf32> -> vector<2x8x1xf32>
    %35 = arith.mulf %33, %34 : vector<2x8x1xf32>
    %cst_16 = arith.constant 2.000000e+00 : f32
    %36 = vector.broadcast %cst_16 : f32 to vector<2x8x1xf32>
    %37 = arith.subf %36, %35 : vector<2x8x1xf32>
    %38 = arith.mulf %34, %37 : vector<2x8x1xf32>
    %39 = vector.broadcast %38 : vector<2x8x1xf32> to vector<2x8x8xf32>
    %40 = arith.mulf %31, %39 : vector<2x8x8xf32>
    %c0_17 = arith.constant 0 : index
    %c0_18 = arith.constant 0 : index
    %c0_19 = arith.constant 0 : index
    %c0_20 = arith.constant 0 : index
    %41 = vector.load %arg10[%c0_17, %c0_18, %c0_19, %c0_20] : memref<1x2x8x8xf32, #tpu.memory_space<vmem>>, vector<1x2x8x8xf32>
    %42 = vector.shape_cast %41 : vector<1x2x8x8xf32> to vector<2x8x8xf32>
    %43 = vector.shape_cast %40 : vector<2x8x8xf32> to vector<1x2x8x8xf32>
    tpu.vector_store %arg10[%c0_17, %c0_18, %c0_19, %c0_20], %43 {strides = array<i32>} : memref<1x2x8x8xf32, #tpu.memory_space<vmem>>, vector<1x2x8x8xf32>,
    %cst_21 = arith.constant dense<0.000000e+00> : vector<2x8x16xf32>
    %44 = tpu.matmul %40, %12, %cst_21 {dimension_numbers = #tpu.dot_dimension_numbers<[2], [1], [1], [2], [0, 0, 0, 1, 1, 2], [0], [0]>} : vector<2x8x8xf32>, vector<2x8x16xf32>, vector<2x8x16xf32> -> vector<2x8x16xf32>
    %c0_22 = arith.constant 0 : index
    %c0_23 = arith.constant 0 : index
    %c0_24 = arith.constant 0 : index
    %45 = vector.load %arg5[%c0_22, %c0_23, %c0_24] : memref<2x16x32xf32, #tpu.memory_space<vmem>>, vector<2x16x32xf32>
    %cst_25 = arith.constant dense<0.000000e+00> : vector<2x8x32xf32>
    %46 = tpu.matmul %44, %45, %cst_25 {dimension_numbers = #tpu.dot_dimension_numbers<[2], [1], [1], [2], [0, 0, 0, 1, 1, 2], [0], [0]>} : vector<2x8x16xf32>, vector<2x16x32xf32>, vector<2x8x32xf32> -> vector<2x8x32xf32>
    %cst_26 = arith.constant dense<0.000000e+00> : vector<8x32xf32>
    %47 = vector.multi_reduction <add>, %46, %cst_26 [0] : vector<2x8x32xf32> to vector<8x32xf32>
    %48 = arith.addf %1, %47 : vector<8x32xf32>
    %c0_27 = arith.constant 0 : index
    %c0_28 = arith.constant 0 : index
    %49 = vector.load %arg6[%c0_27, %c0_28] : memref<1x32xf32, #tpu.memory_space<vmem>>, vector<1x32xf32>
    %50 = vector.broadcast %49 : vector<1x32xf32> to vector<8x32xf32>
    %51 = arith.addf %48, %50 : vector<8x32xf32>
    %c0_29 = arith.constant 0 : index
    %c0_30 = arith.constant 0 : index
    %52 = vector.load %arg7[%c0_29, %c0_30] : memref<1x32xf32, #tpu.memory_space<vmem>>, vector<1x32xf32>
    %c0_31 = arith.constant 0 : index
    %c0_32 = arith.constant 0 : index
    %53 = vector.load %arg8[%c0_31, %c0_32] : memref<1x32xf32, #tpu.memory_space<vmem>>, vector<1x32xf32>
    %cst_33 = arith.constant dense<0.000000e+00> : vector<8xf32>
    %54 = vector.multi_reduction <add>, %51, %cst_33 [1] : vector<8x32xf32> to vector<8xf32>
    %55 = vector.shape_cast %54 : vector<8xf32> to vector<8x1xf32>
    %cst_34 = arith.constant 3.200000e+01 : f32
    %56 = vector.broadcast %cst_34 : f32 to vector<8x1xf32>
    %57 = arith.divf %55, %56 : vector<8x1xf32>
    %58 = vector.broadcast %57 : vector<8x1xf32> to vector<8x32xf32>
    %59 = arith.subf %51, %58 : vector<8x32xf32>
    %60 = arith.mulf %59, %59 : vector<8x32xf32>
    %cst_35 = arith.constant dense<0.000000e+00> : vector<8xf32>
    %61 = vector.multi_reduction <add>, %60, %cst_35 [1] : vector<8x32xf32> to vector<8xf32>
    %62 = vector.shape_cast %61 : vector<8xf32> to vector<8x1xf32>
    %cst_36 = arith.constant 3.200000e+01 : f32
    %63 = vector.broadcast %cst_36 : f32 to vector<8x1xf32>
    %64 = arith.divf %62, %63 : vector<8x1xf32>
    %65 = vector.broadcast %57 : vector<8x1xf32> to vector<8x32xf32>
    %66 = arith.subf %51, %65 : vector<8x32xf32>
    %cst_37 = arith.constant 9.99999996E-13 : f32
    %67 = vector.broadcast %cst_37 : f32 to vector<8x1xf32>
    %68 = arith.addf %64, %67 : vector<8x1xf32>
    %69 = math.rsqrt %68 : vector<8x1xf32>
    %70 = vector.broadcast %69 : vector<8x1xf32> to vector<8x32xf32>
    %71 = arith.mulf %66, %70 : vector<8x32xf32>
    %72 = vector.broadcast %52 : vector<1x32xf32> to vector<8x32xf32>
    %73 = arith.mulf %71, %72 : vector<8x32xf32>
    %74 = vector.broadcast %53 : vector<1x32xf32> to vector<8x32xf32>
    %75 = arith.addf %73, %74 : vector<8x32xf32>
    %c0_38 = arith.constant 0 : index
    %c0_39 = arith.constant 0 : index
    %c0_40 = arith.constant 0 : index
    %76 = vector.load %arg9[%c0_38, %c0_39, %c0_40] : memref<1x8x32xf32, #tpu.memory_space<vmem>>, vector<1x8x32xf32>
    %77 = vector.shape_cast %76 : vector<1x8x32xf32> to vector<8x32xf32>
    %78 = vector.shape_cast %75 : vector<8x32xf32> to vector<1x8x32xf32>
    tpu.vector_store %arg9[%c0_38, %c0_39, %c0_40], %78 {strides = array<i32>} : memref<1x8x32xf32, #tpu.memory_space<vmem>>, vector<1x8x32xf32>,
    return
  }
  func.func @transform_0(%arg0: i32) -> (i32, i32, i32) {
    %c0_i32 = arith.constant 0 : i32
    %c0_i32_0 = arith.constant 0 : i32
    %c0_i32_1 = arith.constant 0 : i32
    return %arg0, %c0_i32, %c0_i32_0 : i32, i32, i32
  }
  func.func @transform_1(%arg0: i32) -> (i32, i32, i32) {
    %c0_i32 = arith.constant 0 : i32
    %c0_i32_0 = arith.constant 0 : i32
    %c0_i32_1 = arith.constant 0 : i32
    return %arg0, %c0_i32, %c0_i32_0 : i32, i32, i32
  }
  func.func @transform_2(%arg0: i32) -> (i32, i32, i32) {
    %c0_i32 = arith.constant 0 : i32
    %c0_i32_0 = arith.constant 0 : i32
    %c0_i32_1 = arith.constant 0 : i32
    %c0_i32_2 = arith.constant 0 : i32
    return %c0_i32, %c0_i32_0, %c0_i32_1 : i32, i32, i32
  }
  func.func @transform_3(%arg0: i32) -> (i32, i32, i32) {
    %c0_i32 = arith.constant 0 : i32
    %c0_i32_0 = arith.constant 0 : i32
    %c0_i32_1 = arith.constant 0 : i32
    %c0_i32_2 = arith.constant 0 : i32
    return %c0_i32, %c0_i32_0, %c0_i32_1 : i32, i32, i32
  }
  func.func @transform_4(%arg0: i32) -> (i32, i32, i32) {
    %c0_i32 = arith.constant 0 : i32
    %c0_i32_0 = arith.constant 0 : i32
    %c0_i32_1 = arith.constant 0 : i32
    %c0_i32_2 = arith.constant 0 : i32
    return %c0_i32, %c0_i32_0, %c0_i32_1 : i32, i32, i32
  }
  func.func @transform_5(%arg0: i32) -> (i32, i32) {
    %c0_i32 = arith.constant 0 : i32
    %c0_i32_0 = arith.constant 0 : i32
    %c0_i32_1 = arith.constant 0 : i32
    return %c0_i32, %c0_i32_0 : i32, i32
  }
  func.func @transform_6(%arg0: i32) -> (i32, i32) {
    %c0_i32 = arith.constant 0 : i32
    %c0_i32_0 = arith.constant 0 : i32
    %c0_i32_1 = arith.constant 0 : i32
    return %c0_i32, %c0_i32_0 : i32, i32
  }
  func.func @transform_7(%arg0: i32) -> (i32, i32) {
    %c0_i32 = arith.constant 0 : i32
    %c0_i32_0 = arith.constant 0 : i32
    %c0_i32_1 = arith.constant 0 : i32
    return %c0_i32, %c0_i32_0 : i32, i32
  }
  func.func @transform_8(%arg0: i32) -> (i32, i32, i32) {
    %c0_i32 = arith.constant 0 : i32
    %c0_i32_0 = arith.constant 0 : i32
    %c0_i32_1 = arith.constant 0 : i32
    return %arg0, %c0_i32, %c0_i32_0 : i32, i32, i32
  }
  func.func @transform_9(%arg0: i32) -> (i32, i32, i32, i32) {
    %c0_i32 = arith.constant 0 : i32
    %c0_i32_0 = arith.constant 0 : i32
    %c0_i32_1 = arith.constant 0 : i32
    %c0_i32_2 = arith.constant 0 : i32
    return %arg0, %c0_i32, %c0_i32_0, %c0_i32_1 : i32, i32, i32, i32
  }
}

</mosaic_0001>

<bundles_post_ra>
// kernel: tpu_custom_call.1
= control target key start
LH: loop header
LB: loop body
LE: loop exit
PB: predicated region body
PF: predicated region fallthrough
CT: control target
= control target key end

     0   :  { %s1413_s0 = inlined_call_operand.vmem [shape: f32[2,8,32], index: 0, kind: input, shape index: {}]   ;;  %s1414_s1 = inlined_call_operand.vmem [shape: s32[2,1,8], index: 1, kind: input, shape index: {}]   ;;  %s1415_s2 = inlined_call_operand.vmem [shape: f32[6,32,16], index: 2, kind: input, shape index: {}]   ;;  %s1416_s3 = inlined_call_operand.vmem [shape: f32[6,1,16], index: 3, kind: input, shape index: {}]   ;;  %s1417_s4 = inlined_call_operand.vmem [shape: f32[2,16,32], index: 4, kind: input, shape index: {}]   ;;  %s1418_s5 = inlined_call_operand.vmem [shape: f32[1,32], index: 5, kind: input, shape index: {}]   ;;  %s1419_s6 = inlined_call_operand.vmem [shape: f32[1,32], index: 6, kind: input, shape index: {}]   ;;  %s1420_s7 = inlined_call_operand.vmem [shape: f32[1,32], index: 7, kind: input, shape index: {}]   ;;  %s1421_s8 = inlined_call_operand.hbm [shape: f32[2,8,32], index: 8, kind: output, shape index: {0}]   ;;  %s1422_s9 = inlined_call_operand.hbm [shape: f32[2,2,8,8], index: 9, kind: output, shape index: {1}]  }
   0x1   :  { %1423 = sst [smem:[#allocation9_spill]] %s1413_s0 }
   0x2   :  { %1424 = sst [smem:[#allocation10_spill]] %s1414_s1 }
   0x3   :  { %1425 = sst [smem:[#allocation11_spill]] %s1415_s2 }
   0x4   :  { %15 = vsyncpa [#allocation3], 0 }
   0x5   :  { %17 = vsyncpa [#allocation3 + $0x1], 0 }
   0x6   :  { %18 = vsyncpa [#allocation5], 0 }
   0x7   :  { %20 = vsyncpa [#allocation5 + $0x1], 0  ;;  %s1151_s30 = smov 0   ;;  %s1153_s10 = smov 0  }
   0x8   :  { %s1155_s11 = smov 0   ;;  %s1157_s12 = smov 0  }
   0x9 LB: > { %s1172_s13 = sadd.s32 4294967295, %s1095_s12   ;;  %s903_s14 = sadd.s32 4294967294, %s1095_s12   ;;  %s1095_s12 = sphi %s1157_s12, %s1436_s12   ;;  %s1091_s11 = sphi %s1155_s11, %s1435_s11   ;;  %s1087_s10 = sphi %s1153_s10, %s1434_s10   ;;  %s1083_s30 = sphi %s1151_s30, %s1433_s30  }
   0xa   : > { %s1176_s15 = sadd.s32 1, %s1095_s12   ;;  %s211_s16 = sadd.s32 1, %s1091_s11 }
   0xb   : > { %s208_s17 = ssub.s32 %s1095_s12, %s1176_s15  ;;  %p221_p0 = scmp.ne.s32.totalorder %s1091_s11, %s1087_s10 }
   0xc   : > { %p209_p1 = scmp.eq.s32.totalorder %s208_s17, 0  ;;  %p222_p2 = scmp.eq.s32.totalorder %s1172_s13, 1 }
   0xd   : > { %p227_p3 = scmp.ne.s32.totalorder %s1087_s10, %s1083_s30  ;;  %p228_p4 = scmp.eq.s32.totalorder %s903_s14, 1 }
   0xe   : > { %s1187_s18 = scalar_select %p209_p1, %s1091_s11, %s211_s16  }
   0xf   : > { %p1189_p5 = por %p222_p2, %p221_p0  ;;  %p1193_p6 = por %p228_p4, %p227_p3 }
  0x10   : > { %1426 = sst [smem:[#allocation8_spill]] %s1187_s18  ;;  %p906_p7 = scmp.ge.s32.totalorder %s1095_s12, 1 }
  0x11   : > { %p303_p8 = scmp.lt.s32.totalorder %s1095_s12, 3 }
  0x13   : > { %p304_p9 = pnand %p906_p7, %p303_p8 }
  0x14   : > { %s1429_s2 = sld [smem:[#allocation11_spill]] (!%p304_p9)  ;;  %p346_p10 = scmp.lt.s32.totalorder (!%p304_p9), %s1172_s13, 1 }
  0x15   : > { %307 = sbr.rel (%p304_p9) target bundleno = 1110 (0x456), region = 52  ;;  %s1430_s0 = sld [smem:[#allocation9_spill]] (!%p304_p9) }
  0x16   : > { %s1431_s1 = sld [smem:[#allocation10_spill]] (!%p304_p9)  ;;  %s1327_s29 = sand.u32 (!%p304_p9), 1, %s1087_s10  }
  0x17   : > { %s908_s17 = sshll.u32 (!%p304_p9), %s1327_s29, 4  ;;  %s931_s27 = sshll.u32 (!%p304_p9), %s1172_s13, 4 }
  0x18   : > { %s1331_s21 = scalar_lea.vmem (!%p304_p9), [#allocation4], %s908_s17  ;;  %s770_s22 = scalar_lea.sflag (!%p304_p9), [#allocation5], %s1327_s29 }
  0x1a   : > { %v365_v0 = vld [vmem:[%s1429_s2 + $0x58] sm:$0xff]  ;;  %v364_v1 = vld [vmem:[%s1429_s2 + $0x50] sm:$0xff]  ;;  %v363_v4 = vld [vmem:[%s1429_s2 + $0x48] sm:$0xff]  ;;  %s1216_s16 = scalar_select %p346_p10, %s1172_s13, 1  ;;  %vm402_vm0 = vcmask 261120   ;;  %vm526_vm1 = vcmask 130048  }
  0x1b   : > { %458 = vmatpush.msra.mxu2 %v365_v0  ;;  %v369_v2 = vld [vmem:[%s1429_s2 + $0x78] sm:$0xff]  ;;  %v368_v5 = vld [vmem:[%s1429_s2 + $0x70] sm:$0xff]  ;;  %v362_v7 = vld [vmem:[%s1429_s2 + $0x40] sm:$0xff]  ;;  %v1097_v30 = vmov 0   ;;  %vm588_vm4 = vcmask 64512  }
  0x1c   : > { %v357_v3 = vld [vmem:[%s1429_s2 + $0x18] sm:$0xff]  ;;  %478 = vmatpush.msra.mxu3 %v369_v2  ;;  %v356_v6 = vld [vmem:[%s1429_s2 + $0x10] sm:$0xff]  ;;  %v367_v8 = vld [vmem:[%s1429_s2 + $0x68] sm:$0xff]  ;;  %s909_s14 = sshll.u32 %s1216_s16, 3  ;;  %s352_s18 = scalar_lea.vmem %s1431_s1, %s1216_s16 }
  0x1d   : > { %418 = vmatpush.msra.mxu0 %v357_v3  ;;  %459 = vmatpush.msra.mxu2 %v364_v1  ;;  %v355_v9 = vld [vmem:[%s1429_s2 + $0x8] sm:$0xff]  ;;  %v366_v10 = vld [vmem:[%s1429_s2 + $0x60] sm:$0xff]  ;;  %v361_v11 = vld [vmem:[%s1429_s2 + $0x38] sm:$0xff]  ;;  %s349_s28 = scalar_lea.vmem %s1430_s0, %s909_s14  ;;  %s796_s16 = sshll.u32 %s1331_s21, 4  ;;  %s797_s16 = int_to_ptr.vmem [resolvable:$true] %s796_s16 }
  0x1e   : > { %479 = vmatpush.msra.mxu3 %v368_v5  ;;  %v360_v12 = vld [vmem:[%s1429_s2 + $0x30] sm:$0xff]  ;;  %v354_v13 = vld [vmem:[%s1429_s2] sm:$0xff]  ;;  %438 = vmatpush.msra.mxu1 %v361_v11  ;;  %v359_v14 = vld [vmem:[%s1429_s2 + $0x28] sm:$0xff]  ;;  %s1021_s0 = scalar_lea.hbm %s1422_s9, 32 }
  0x1f   : > { %419 = vmatpush.msra.mxu0 %v356_v6  ;;  %460 = vmatpush.msra.mxu2 %v363_v4  ;;  %v1252_v15 = vld [vmem:[%s349_s28] sm:$0xff]  ;;  %v373_v41 = vld [vmem:[%s1429_s2 + $0x98] sm:$0xff]  ;;  %v372_v42 = vld [vmem:[%s1429_s2 + $0x90] sm:$0xff] }
  0x20   : > { %480 = vmatpush.msra.mxu3 %v367_v8  ;;  %439 = vmatpush.msra.mxu1 %v360_v12  ;;  %v358_v16 = vld [vmem:[%s1429_s2 + $0x20] sm:$0xff]  ;;  %v371_v43 = vld [vmem:[%s1429_s2 + $0x88] sm:$0xff]  ;;  %v377_v45 = vld [vmem:[%s1429_s2 + $0xb8] sm:$0xff] }
  0x21   : > { %420 = vmatpush.msra.mxu0 %v355_v9  ;;  %461 = vmatpush.msra.mxu2 %v362_v7  ;;  %v980_v17 = vld [vmem:[%s1416_s3 + $0x2] ss:$0 sm:$0xff]  ;;  %v981_v18 = vld [vmem:[%s1416_s3] ss:$0 sm:$0xff]  ;;  %v982_v19 = vld [vmem:[%s1416_s3 + $0x3] ss:$0 sm:$0xff] }
  0x22   : > { %912 = vmatmul.msk.f32.vlgmr.msra.gmra.mxu2 %vm402_vm0, %v1252_v15  ;;  %481 = vmatpush.msra.mxu3 %v366_v10  ;;  %v983_v21 = vld [vmem:[%s1416_s3 + $0x1] ss:$0 sm:$0xff]  ;;  %v581_v29 = vld [vmem:[%s352_s18] sm:$0x1]  ;;  %v376_v46 = vld [vmem:[%s1429_s2 + $0xb0] sm:$0xff]  ;;  %s795_s18 = scalar_lea.hbm %s1422_s9, %s931_s27 }
  0x23   : > { %421 = vmatpush.msra.mxu0 %v354_v13  ;;  %913 = vmatmul.msk.f32.vlgmr.msra.gmra.mxu3 %vm402_vm0, %v1252_v15  ;;  %vm582_vm2 = vcmp.gt.s32.totalorder %v581_v29, 0  ;;  %v370_v44 = vld [vmem:[%s1429_s2 + $0x80] sm:$0xff]  ;;  %v375_v47 = vld [vmem:[%s1429_s2 + $0xa8] sm:$0xff]  ;;  %v1098_v29 = vmov 32.0   ;;  %s798_s14 = sshll.u32 %s795_s18, 4  ;;  %s799_s14 = int_to_ptr.hbm [resolvable:$true] %s798_s14 }
  0x24   : > { %910 = vmatmul.msk.f32.vlgmr.msra.gmra.mxu0 %vm402_vm0, %v1252_v15  ;;  %440 = vmatpush.msra.mxu1 %v359_v14  ;;  %v583_v31 = vsel %vm582_vm2, 1, %v1097_v30  ;;  %v374_v48 = vld [vmem:[%s1429_s2 + $0xa0] sm:$0xff]  ;;  %v666_v1 = vld [vmem:[%s1417_s4 + $0x8] sm:$0xff]  ;;  %s1015_s23 = sshra.s32 %s799_s14, 4  ;;  %s1016_s23 = int_to_ptr.hbm [resolvable:$true] %s1015_s23 }
  0x25   : > { %v584_v32 = vperm.slane %v583_v31, 0  ;;  %498 = vmatpush.msrb.mxu0 %v373_v41  ;;  %v984_v59 = vld [vmem:[%s1416_s3 + $0x4] ss:$0 sm:$0xff]  ;;  %v985_v62 = vld [vmem:[%s1416_s3 + $0x5] ss:$0 sm:$0xff]  ;;  %s1017_s24 = scalar_lea.hbm %s1016_s23, 16  ;;  %p1022_p0 = scmp.lt.s32.totalorder %s1016_s23, %s1422_s9 }
  0x26   : > { %441 = vmatpush.msra.mxu1 %v358_v16  ;;  %v665_v14 = vld [vmem:[%s1417_s4] sm:$0xff]  ;;  %v668_v16 = vld [vmem:[%s1417_s4 + $0x18] sm:$0xff]  ;;  %p1018_p11 = scmp.ne.s32.totalorder %s1016_s23, %s1017_s24  ;;  %p1023_p1 = scmp.lt.s32.totalorder %s1021_s0, %s1017_s24 }
  0x27   : > { %911 = vmatmul.msk.f32.vlgmr.msra.gmra.mxu1 %vm402_vm0, %v1252_v15  ;;  %vm585_vm3 = vcmp.eq.s32.totalorder %v584_v32, 1  ;;  %499 = vmatpush.msrb.mxu0 %v372_v42 }
  0x28   : > { %518 = vmatpush.msrb.mxu1 %v377_v45  ;;  %p1019_p12 = pnand %p1018_p11, %p1189_p5  ;;  %p1024_p2 = por %p1023_p1, %p1022_p0 }
  0x29   : > { %500 = vmatpush.msrb.mxu0 %v371_v43 }
  0x2a   : > { %519 = vmatpush.msrb.mxu1 %v376_v46  ;;  %p1020_p13 = pneg %p1019_p12 }
  0x2b   : > { %501 = vmatpush.msrb.mxu0 %v370_v44 }
  0x2c   : > { %914 = vmatmul.msk.f32.vlgmr.msrb.gmra.mxu0 %vm402_vm0, %v1252_v15  ;;  %520 = vmatpush.msrb.mxu1 %v375_v47  ;;  %p1025_p3 = pnand %p1024_p2, %p1020_p13 }
  0x2e   : > { %521 = vmatpush.msrb.mxu1 %v374_v48 }
  0x2f   : > { %915 = vmatmul.msk.f32.vlgmr.msrb.gmra.mxu1 %vm402_vm0, %v1252_v15 }
  0xa1   : > { %v423_v20 = vpop.f32.mrf.mxu0 }
  0xa2   : > { %v424_v26 = vadd.f32 %v981_v18, %v423_v20 }
  0xa4   : > { %v443_v23 = vpop.f32.mrf.mxu1 }
  0xa5   : > { %v463_v22 = vpop.f32.mrf.mxu2  ;;  %v444_v28 = vadd.f32 %v983_v21, %v443_v23 }
  0xa6   : > { %v464_v24 = vadd.f32 %v980_v17, %v463_v22  ;;  %v483_v25 = vpop.f32.mrf.mxu3  ;;  %v667_v17 = vld [vmem:[%s1417_s4 + $0x10] sm:$0xff] }
  0xa7   : > { %v484_v27 = vadd.f32 %v982_v19, %v483_v25  ;;  %v986_v25 = vld [vmem:[%s1418_s5] ss:$0 sm:$0xff] }
  0xa8   : > { %916 = vmatpush.xpose.msk.msrb.mxu2 %vm526_vm1, %v464_v24 }
  0xa9   : > { %918 = vmatpush.xpose.msk.msrb.mxu3 %vm526_vm1, %v484_v27  ;;  %v503_v60 = vpop.f32.mrf.mxu0 }
  0xaa   : > { %v504_v61 = vadd.f32 %v984_v59, %v503_v60 }
  0xab   : > { %917 = vmatmul.msk.f32.vlgmr.msrb.gmra.mxu2 %vm526_vm1, %v424_v26 }
  0xac   : > { %919 = vmatmul.msk.f32.vlgmr.msrb.gmra.mxu3 %vm526_vm1, %v444_v28  ;;  %637 = vmatpush.msra.mxu0 %v504_v61  ;;  %v523_v63 = vpop.f32.mrf.mxu1 }
  0xad   : > { %v524_v0 = vadd.f32 %v985_v62, %v523_v63  ;;  %686 = vmatpush.msra.mxu2 %v666_v1  ;;  %709 = vmatpush.msra.mxu3 %v668_v16 }
  0xaf   : > { %660 = vmatpush.msra.mxu1 %v524_v0  ;;  %687 = vmatpush.msra.mxu2 %v665_v14 }
  0xb0   : > { %710 = vmatpush.msra.mxu3 %v667_v17 }
 0x12e   : > { %v550_v33 = vpop.f32.mrf.mxu2 }
 0x12f   : > { %v579_v34 = vmul.f32 0.25, %v550_v33  ;;  %v576_v35 = vpop.f32.mrf.mxu3 }
 0x130   : > { %v580_v37 = vmul.f32 0.25, %v576_v35 }
 0x131   : > { %v586_v36 = vsel %vm585_vm3, -1e+09, %v579_v34 }
 0x132   : > { %v589_v38 = vsel %vm588_vm4, %v586_v36, -inf  ;;  %v587_v39 = vsel %vm585_vm3, -1e+09, %v580_v37 }
 0x133   : > { %590 = vmax.xlane.f32.xlu0 %v589_v38  ;;  %v592_v40 = vsel %vm588_vm4, %v587_v39, -inf }
 0x13b   : > { %593 = vmax.xlane.f32.xlu0 %v592_v40 }
 0x1a6   : > { %v591_v49 = vpop.xlane.xlu0 %590 }
 0x1a7   : > { %v595_v50 = vsub.f32 %v586_v36, %v591_v49 }
 0x1a9   : > { %v597_v51 = vmul.f32 1.442695, %v595_v50 }
 0x1ab   : > { %989 = vpow2.f32 %v597_v51 }
 0x1ae   : > { %v594_v52 = vpop.xlane.xlu0 %593 }
 0x1af   : > { %v596_v53 = vsub.f32 %v587_v39, %v594_v52 }
 0x1b1   : > { %v990_v54 = vpop.eup %989  ;;  %v599_v55 = vmul.f32 1.442695, %v596_v53 }
 0x1b2   : > { %v601_v56 = vsel %vm588_vm4, %v990_v54, 0.0 }
 0x1b3   : > { %991 = vpow2.f32 %v599_v55  ;;  %602 = vadd.xlane.f32.xlu1 %v601_v56 }
 0x1b9   : > { %v992_v57 = vpop.eup %991 }
 0x1ba   : > { %v604_v58 = vsel %vm588_vm4, %v992_v57, 0.0 }
 0x1bb   : > { %605 = vadd.xlane.f32.xlu1 %v604_v58 }
 0x226   : > { %v603_v2 = vpop.xlane.xlu1 %602 }
 0x227   : > { %993 = vrcp.f32 %v603_v2 }
 0x22d   : > { %v994_v3 = vpop.eup %993 }
 0x22e   : > { %v609_v4 = vmul.f32 %v994_v3, %v603_v2  ;;  %v606_v5 = vpop.xlane.xlu1 %605 }
 0x22f   : > { %995 = vrcp.f32 %v606_v5 }
 0x230   : > { %v611_v6 = vsub.f32 2.0, %v609_v4  ;;  %997 = vrcp.f32 %v1098_v29 }
 0x232   : > { %v613_v7 = vmul.f32 %v994_v3, %v611_v6 }
 0x234   : > { %v615_v8 = vmul.f32 %v990_v54, %v613_v7 }
 0x235   : > { %v996_v9 = vpop.eup %995 }
 0x236   : > { %v610_v10 = vmul.f32 %v996_v9, %v606_v5  ;;  %920 = vmatmul.msk.f32.vlgmr.msra.gmra.mxu0 %vm588_vm4, %v615_v8  ;;  %617 = vst.msk [vmem:[%s1331_s21] sm:$0xff] %vm588_vm4, %v615_v8  ;;  %v998_v30 = vpop.eup %997 }
 0x237   : > { %v730_v31 = vmul.f32 32.0, %v998_v30  ;;  %vm734_vm5 = vweird.f32 %v998_v30 }
 0x238   : > { %v612_v11 = vsub.f32 2.0, %v610_v10 }
 0x239   : > { %v731_v32 = vsub.f32 1.0, %v730_v31 }
 0x23a   : > { %v614_v12 = vmul.f32 %v996_v9, %v612_v11 }
 0x23b   : > { %v732_v33 = vmul.f32 %v998_v30, %v731_v32 }
 0x23c   : > { %v616_v13 = vmul.f32 %v992_v57, %v614_v12 }
 0x23d   : > { %v733_v34 = vadd.f32 %v998_v30, %v732_v33 }
 0x23e   : > { %921 = vmatmul.msk.f32.vlgmr.msra.gmra.mxu1 %vm588_vm4, %v616_v13  ;;  %618 = vst.msk [vmem:[%s1331_s21 + $0x8] sm:$0xff] %vm588_vm4, %v616_v13 }
 0x23f   : > { %v735_v35 = vsel %vm734_vm5, %v998_v30, %v733_v34 }
 0x2b3   : > { %v639_v18 = vpop.f32.mrf.mxu0 }
 0x2b4   : > { %922 = vmatmul.msk.f32.vlgmr.msra.gmra.mxu2 %vm526_vm1, %v639_v18 }
 0x2bb   : > { %v662_v19 = vpop.f32.mrf.mxu1 }
 0x2bc   : > { %923 = vmatmul.msk.f32.vlgmr.msra.gmra.mxu3 %vm526_vm1, %v662_v19 }
 0x337   : > { %v689_v20 = vpop.f32.mrf.mxu2 }
 0x338   : > { %v715_v22 = vsel %vm402_vm0, %v689_v20, 0.0 }
 0x33f   : > { %v712_v21 = vpop.f32.mrf.mxu3 }
 0x340   : > { %v716_v23 = vsel %vm402_vm0, %v712_v21, 0.0 }
 0x341   : > { %v717_v24 = vadd.f32 %v716_v23, %v715_v22 }
 0x343   : > { %v718_v26 = vadd.f32 %v717_v24, %v1252_v15 }
 0x345   : > { %v723_v27 = vadd.f32 %v986_v25, %v718_v26 }
 0x347   : > { %v726_v28 = vsel %vm402_vm0, %v723_v27, 0.0 }
 0x348   : > { %727 = vadd.xlane.f32.xlu2 %v726_v28 }
 0x3bb   : > { %v728_v36 = vpop.xlane.xlu2 %727 }
 0x3bc   : > { %v736_v37 = vmul.f32 %v735_v35, %v728_v36 }
 0x3be   : > { %v737_v15 = vsub.f32 %v723_v27, %v736_v37 }
 0x3c0   : > { %v738_v38 = vmul.f32 %v737_v15, %v737_v15 }
 0x3c2   : > { %v739_v39 = vsel %vm402_vm0, %v738_v38, 0.0 }
 0x3c3   : > { %740 = vadd.xlane.f32.xlu2 %v739_v39 }
 0x3c4   : > { %1028 = shalt.err (!%p1025_p3)
}
 0x3c5   : > { %s1099_s21 = smov 128   ;;  %s1100_s27 = smov 8   ;;  %v987_v49 = vld [vmem:[%s1419_s6] ss:$0 sm:$0xff] }
 0x3c6   : > { %933 = dma.vmem_to_hbm [thread:$0]  (%p1189_p5), %s797_s16, 256, %s799_s14, %s770_s22, %s1099_s21, %s1099_s21, %s1100_s27  }
 0x3c7   : > { %s907_s0 = sshll.u32 %s1327_s29, 3  ;;  %s926_s1 = sshll.u32 %s1172_s13, 3  ;;  %v988_v52 = vld [vmem:[%s1420_s7] ss:$0 sm:$0xff] }
 0x3c8   : > { %s780_s16 = scalar_lea.hbm %s1421_s8, %s926_s1  ;;  %s338_s13 = scalar_lea.vmem [#allocation2], %s907_s0 }
 0x3c9   : > { %s782_s23 = sshll.u32 %s338_s13, 4  ;;  %s784_s24 = sshll.u32 %s780_s16, 4  ;;  %s783_s23 = int_to_ptr.vmem [resolvable:$true] %s782_s23  ;;  %s785_s24 = int_to_ptr.hbm [resolvable:$true] %s784_s24 }
 0x3ca   : > { %s765_s25 = scalar_lea.sflag [#allocation3], %s1327_s29  ;;  %s1043_s26 = sshra.s32 %s785_s24, 4  ;;  %s1044_s26 = int_to_ptr.hbm [resolvable:$true] %s1043_s26 }
 0x3cb   : > { %s1045_s21 = scalar_lea.hbm %s1044_s26, 8  ;;  %s1049_s0 = scalar_lea.hbm %s1421_s8, 16 }
 0x3cc   : > { %p1046_p4 = scmp.ne.s32.totalorder %s1044_s26, %s1045_s21  ;;  %p1050_p9 = scmp.lt.s32.totalorder %s1044_s26, %s1421_s8 }
 0x3cd   : > { %p1051_p10 = scmp.lt.s32.totalorder %s1049_s0, %s1045_s21 }
 0x3ce   : > { %p1047_p7 = pnand %p1046_p4, %p1189_p5 }
 0x3cf   : > { %p1052_p11 = por %p1051_p10, %p1050_p9 }
 0x3d0   : > { %p1048_p8 = pneg %p1047_p7 }
 0x3d2   : > { %p1053_p12 = pnand %p1052_p11, %p1048_p8 }
 0x436   : > { %v741_v40 = vpop.xlane.xlu2 %740 }
 0x437   : > { %v742_v41 = vmul.f32 %v741_v40, %v735_v35 }
 0x439   : > { %v743_v42 = vadd.f32 1e-12, %v742_v41 }
 0x43b   : > { %999 = vrsqrt.f32 %v743_v42  ;;  %vm750_vm7 = vweird.f32 %v743_v42 }
 0x441   : > { %v1000_v43 = vpop.eup %999 }
 0x442   : > { %v745_v44 = vmul.f32 %v1000_v43, %v743_v42  ;;  %vm751_vm6 = vweird.f32 %v1000_v43 }
 0x443   : > { %vm752_vm8 = vmor %vm750_vm7, %vm751_vm6 }
 0x444   : > { %v746_v45 = vmul.f32 %v1000_v43, %v745_v44 }
 0x446   : > { %v747_v46 = vmul.f32 0.5, %v746_v45 }
 0x448   : > { %v748_v47 = vsub.f32 1.5, %v747_v46 }
 0x44a   : > { %v749_v48 = vmul.f32 %v1000_v43, %v748_v47 }
 0x44c   : > { %v753_v50 = vsel %vm752_vm8, %v1000_v43, %v749_v48 }
 0x44d   : > { %v754_v51 = vmul.f32 %v753_v50, %v737_v15 }
 0x44f   : > { %v758_v53 = vmul.f32 %v987_v49, %v754_v51 }
 0x451   : > { %v762_v54 = vadd.f32 %v988_v52, %v758_v53 }
 0x453   : > { %763 = vst.msk [vmem:[%s338_s13] sm:$0xff] %vm402_vm0, %v762_v54 }
 0x454   : > { %1056 = shalt.err (!%p1053_p12)
}
 0x455   : > { %932 = dma.vmem_to_hbm [thread:$0]  (%p1189_p5), %s783_s23, 128, %s785_s24, %s765_s25  }
 0x456 PF: > { %p943_p13 = scmp.ge.s32.totalorder %s1095_s12, 2  ;;  %s813_s29 = sand.u32 1, %s1083_s30  }
 0x457   : > { %s814_s17 = scalar_lea.sflag [#allocation3], %s813_s29 }
 0x458   : > { %p937_p0 = pnand %p943_p13, %p1193_p6 }
 0x45a   : > { %p938_p1 = pneg %p937_p0 }
 0x45c   : > { %1074 = dma.done.wait (%p938_p1), %s814_s17, 128  }
 0x45d   : > { %1076 = vsyncadd (%p938_p1), %s814_s17, 4294967168  ;;  %s824_s18 = scalar_lea.sflag [#allocation5], %s813_s29 }
 0x45e   : > { %1078 = dma.done.wait (%p938_p1), %s824_s18, 256  }
 0x45f   : > { %1080 = vsyncadd (%p938_p1), %s824_s18, 4294967040  ;;  %s1432_s19 = sld [smem:[#allocation8_spill]]  ;;  %p23_p5 = scmp.ge.s32.totalorder %s1176_s15, 4  }
 0x460   : > { %s1433_s30 = smov %s1087_s10  ;;  %s1434_s10 = smov %s1091_s11 }
 0x461   : > { %s1436_s12 = smov %s1176_s15  ;;  %25 = sbr.rel (!%p23_p5) target bundleno = 9 (0x9), region = 107 }
 0x465   : > { %s1435_s11 = smov %s1432_s19 }
 0x466   :  { %830 = vsyncpa [#allocation3], 1 }
 0x467   :  { %832 = vsyncpa [#allocation3 + $0x1], 1 }
 0x468   :  { %833 = vsyncpa [#allocation5], 1 }
 0x469   :  { %835 = vsyncpa [#allocation5 + $0x1], 1 }

</bundles_post_ra>
